<compile_context>
chip_gen: v6e
topology: v6e:2x2x1
jax: 0.10.0
libtpu: 0.0.40
codegen_flags: <defaults>
</compile_context>

<pallas_src>
import functools

import jax
import jax.numpy as jnp
import numpy as np
from jax import lax
from jax.experimental import pallas as pl
from jax.experimental.pallas import tpu as pltpu


def _round_up(x, m):
    return ((x + m - 1) // m) * m


def _cosmo_loss_kernel(xr_ref, xc_ref, rsid_ref, csid_ref, out_ref,
                       e_acc, ps_acc, *, n_valid, n_views, temperature):
    """One (row-tile, col-tile) step of the contrastive loss.

    xr_ref:   [TM, D]   anchor-row features (pre-normalized, unit L2 norm)
    xc_ref:   [TN, D]   contrast-column features (pre-normalized)
    rsid_ref: [TM, 1]   sample id of each anchor row (int32)
    csid_ref: [1, TN]   sample id of each contrast column (int32)
    out_ref:  [1, 8, 128] per-row-tile partial sum of mean_log_prob_pos
    e_acc:    [TM, 1]   scratch: sum_j exp(logit - 1/T), non-diag valid cols
    ps_acc:   [TM, 1]   scratch: sum over positive cols of (logit - 1/T)
    """
    j = pl.program_id(1)

    @pl.when(j == 0)
    def _():
        e_acc[...] = jnp.zeros_like(e_acc)
        ps_acc[...] = jnp.zeros_like(ps_acc)

    tm = xr_ref.shape[0]
    tn = xc_ref.shape[0]
    inv_t = 1.0 / temperature

    # Features are already unit-normalized by the wrapper, so the tile body is
    # a single transpose-free NT matmul on the MXU (contract last dims).
    cos = lax.dot_general(xr_ref[...], xc_ref[...], (((1,), (1,)), ((), ())),
                          preferred_element_type=jnp.float32)       # [TM, TN]
    # Shifted logits: sim - 1/T = (cos - 1)/T  (<= ~0, exp can never overflow;
    # the shift cancels exactly in the final loss expression).
    shifted = (cos - 1.0) * inv_t

    # Global row / column indices of this tile (iota compares only).
    r_ids = pl.program_id(0) * tm + lax.broadcasted_iota(jnp.int32, (tm, 1), 0)
    c_ids = j * tn + lax.broadcasted_iota(jnp.int32, (1, tn), 1)
    keep = jnp.logical_and(r_ids != c_ids, c_ids < n_valid)   # no self, no pad
    pos = jnp.logical_and(keep, rsid_ref[...] == csid_ref[...])  # other views

    e_acc[...] += jnp.sum(jnp.where(keep, jnp.exp(shifted), 0.0),
                          axis=1, keepdims=True)
    ps_acc[...] += jnp.sum(jnp.where(pos, shifted, 0.0),
                           axis=1, keepdims=True)

    @pl.when(j == pl.num_programs(1) - 1)
    def _():
        # mean_log_prob_pos_i = pos_shift_sum_i/(n_views-1) - log(E_i)
        # (positive count is the static n_views-1; 1/T shift cancels exactly).
        inv_p = 1.0 / (n_views - 1)
        v = ps_acc[...] * inv_p - jnp.log(e_acc[...])            # [TM, 1]
        v = jnp.where(r_ids < n_valid, v, 0.0)       # drop padded anchor rows
        # Lane-dense scalar emission: one (1, 8, 128) block per row tile,
        # written exactly once; the tiny cross-tile sum happens in the caller.
        out_ref[...] = jnp.full(out_ref.shape, jnp.sum(v), jnp.float32)


def cosmo_loss(features, labels=None, mask=None, temperature=0.07,
               contrast_mode='all', base_temperature=0.07):
    """Pallas-backed CosmoLoss.forward.

    `labels`, `mask` and `contrast_mode` are accepted but ignored, exactly as
    in the reference module (mask is overwritten by eye(batch_size) and
    contrast_mode is never used in its forward).
    """
    del labels, mask, contrast_mode
    if features.ndim < 3:
        raise ValueError('`features` needs to be [bsz, n_views, ...], '
                         'at least 3 dimensions are required')
    bsz, n_views = features.shape[0], features.shape[1]
    if n_views < 2:
        raise ValueError('n_views must be >= 2: with a single view there are '
                         'no positives and the reference loss is NaN.')
    feats = features.reshape(bsz, n_views, -1)
    d = feats.shape[-1]
    n = bsz * n_views

    # Sample-major [bsz*n_views, D] layout: no HBM transpose is required (the
    # loss is a mean over anchors and invariant to this row permutation).
    x = feats.reshape(n, d)

    # One-shot L2 row normalization (f32 accumulation, matches F.normalize's
    # 1e-12 norm clamp), then cast back to the caller's dtype so the MXU keeps
    # its fast path.  Hoisting this out of the kernel removes the
    # (g_rows + g_cols)-fold per-tile re-normalization.
    xf = x.astype(jnp.float32)
    inv_norm = lax.rsqrt(jnp.maximum(jnp.sum(xf * xf, axis=1, keepdims=True),
                                     1e-24))
    x = (xf * inv_norm).astype(x.dtype)

    # Tile sizes: one tile for small problems, 256x512 row/col tiles above.
    if n <= 512:
        tm = tn = _round_up(n, 8)
    else:
        tm, tn = 256, 512
    n_pad = max(_round_up(n, max(tm, tn)), tm)
    if n_pad != n:
        x = jnp.pad(x, ((0, n_pad - n), (0, 0)))
    g_rows, g_cols = n_pad // tm, n_pad // tn

    # Tiny sample-id vectors (avoid per-element integer division in-kernel).
    sample_id = jnp.arange(n_pad, dtype=jnp.int32) // n_views
    row_sid = sample_id.reshape(n_pad, 1)
    col_sid = sample_id.reshape(1, n_pad)

    kernel = functools.partial(
        _cosmo_loss_kernel, n_valid=n, n_views=n_views,
        temperature=float(temperature))

    # VMEM budget: double-buffered feature tiles + a few [TM, TN] temporaries.
    est = 4 * (2 * tm * d + 2 * tn * d + 6 * tm * tn + 16 * tm) + (2 << 20)
    vmem_limit = int(min(max(est, 32 * 1024 * 1024), 48 * 1024 * 1024))

    out = pl.pallas_call(
        kernel,
        out_shape=jax.ShapeDtypeStruct((g_rows, 8, 128), jnp.float32),
        grid_spec=pltpu.PrefetchScalarGridSpec(
            num_scalar_prefetch=0,
            grid=(g_rows, g_cols),
            in_specs=[
                pl.BlockSpec((tm, d), lambda i, j: (i, 0)),   # anchor rows
                pl.BlockSpec((tn, d), lambda i, j: (j, 0)),   # contrast cols
                pl.BlockSpec((tm, 1), lambda i, j: (i, 0)),   # row sample ids
                pl.BlockSpec((1, tn), lambda i, j: (0, j)),   # col sample ids
            ],
            out_specs=pl.BlockSpec((1, 8, 128), lambda i, j: (i, 0, 0)),
            scratch_shapes=[pltpu.VMEM((tm, 1), jnp.float32),
                            pltpu.VMEM((tm, 1), jnp.float32)]),
        compiler_params=pltpu.CompilerParams(
            dimension_semantics=("parallel", "arbitrary"),
            vmem_limit_bytes=vmem_limit),
    )(x, x, row_sid, col_sid)

    scale = -(float(temperature) / float(base_temperature)) / n
    return scale * jnp.sum(out[:, 0, 0])


def _cosmo_loss_ref(features, temperature=0.07, base_temperature=0.07):
    """Pure-JAX reference mirroring the PyTorch forward, for validation."""
    bsz, n_views = features.shape[0], features.shape[1]
    feats = features.reshape(bsz, n_views, -1).astype(jnp.float32)
    x = jnp.transpose(feats, (1, 0, 2)).reshape(n_views * bsz, -1)
    x = x / jnp.maximum(jnp.linalg.norm(x, axis=1, keepdims=True), 1e-12)
    sim = (x @ x.T) / temperature
    n = n_views * bsz
    logits_mask = 1.0 - jnp.eye(n, dtype=jnp.float32)
    pos_mask = jnp.tile(jnp.eye(bsz, dtype=jnp.float32), (n_views, n_views))
    pos_mask = pos_mask * logits_mask
    exp_logits = jnp.exp(sim) * logits_mask
    log_prob = sim - jnp.log(exp_logits.sum(1, keepdims=True))
    mean_log_prob_pos = (pos_mask * log_prob).sum(1) / pos_mask.sum(1)
    loss = -(temperature / base_temperature) * mean_log_prob_pos
    return loss.mean()


if __name__ == "__main__":
    # Small, module-consistent shapes: bsz=8, n_views=2, feature dim=32.
    key = jax.random.PRNGKey(0)
    features = jax.random.normal(key, (8, 2, 32), dtype=jnp.float32)
    loss = jax.block_until_ready(cosmo_loss(features))
    ref = _cosmo_loss_ref(features)
    np.testing.assert_allclose(np.asarray(loss), np.asarray(ref),
                               rtol=1e-4, atol=1e-4)

    # A larger, non-tile-aligned shape to exercise the tiled / padded grid
    # path (N = 600 -> padded to 1024, grid = (4 row tiles, 2 col tiles)).
    features2 = jax.random.normal(jax.random.PRNGKey(1), (300, 2, 32),
                                  dtype=jnp.float32)
    loss2 = jax.block_until_ready(cosmo_loss(features2))
    ref2 = _cosmo_loss_ref(features2)
    np.testing.assert_allclose(np.asarray(loss2), np.asarray(ref2),
                               rtol=1e-4, atol=1e-4)

    print("KERNEL_OK")
</pallas_src>

<mosaic_0001>
module attributes {stable_mosaic.version = 11 : i64} {
  func.func @_cosmo_loss_kernel(%arg0: i32, %arg1: i32, %arg2: memref<16x32xf32, #tpu.memory_space<vmem>>, %arg3: memref<16x32xf32, #tpu.memory_space<vmem>>, %arg4: memref<16x1xi32, #tpu.memory_space<vmem>>, %arg5: memref<1x16xi32, #tpu.memory_space<vmem>>, %arg6: memref<1x8x128xf32, #tpu.memory_space<vmem>>, %arg7: memref<16x1xf32, #tpu.memory_space<vmem>>, %arg8: memref<16x1xf32, #tpu.memory_space<vmem>>) attributes {dimension_semantics = [#tpu.dimension_semantics<parallel>, #tpu.dimension_semantics<arbitrary>], iteration_bounds = array<i64: 1, 1>, scalar_prefetch = 0 : i64, scratch_operands = 2 : i64, tpu.core_type = #tpu.core_type<tc>, window_params = [{transform_indices = @transform_0, window_bounds = array<i64: 16, 32>}, {transform_indices = @transform_1, window_bounds = array<i64: 16, 32>}, {transform_indices = @transform_2, window_bounds = array<i64: 16, 1>}, {transform_indices = @transform_3, window_bounds = array<i64: 1, 16>}, {transform_indices = @transform_4, window_bounds = array<i64: 1, 8, 128>}]} {
    %c0_i32 = arith.constant 0 : i32
    %0 = arith.cmpi eq, %arg1, %c0_i32 : i32
    %1 = arith.extui %0 : i1 to i32
    %c0_i32_0 = arith.constant 0 : i32
    %2 = arith.cmpi ne, %1, %c0_i32_0 : i32
    scf.if %2 {
      %cst_26 = arith.constant 0.000000e+00 : f32
      %49 = vector.broadcast %cst_26 : f32 to vector<16x1xf32>
      %c0_27 = arith.constant 0 : index
      %c0_28 = arith.constant 0 : index
      %50 = vector.load %arg7[%c0_27, %c0_28] : memref<16x1xf32, #tpu.memory_space<vmem>>, vector<16x1xf32>
      tpu.vector_store %arg7[%c0_27, %c0_28], %49 {strides = array<i32>} : memref<16x1xf32, #tpu.memory_space<vmem>>, vector<16x1xf32>,
      %cst_29 = arith.constant 0.000000e+00 : f32
      %51 = vector.broadcast %cst_29 : f32 to vector<16x1xf32>
      %c0_30 = arith.constant 0 : index
      %c0_31 = arith.constant 0 : index
      %52 = vector.load %arg8[%c0_30, %c0_31] : memref<16x1xf32, #tpu.memory_space<vmem>>, vector<16x1xf32>
      tpu.vector_store %arg8[%c0_30, %c0_31], %51 {strides = array<i32>} : memref<16x1xf32, #tpu.memory_space<vmem>>, vector<16x1xf32>,
    } else {
    }
    %c0 = arith.constant 0 : index
    %c0_1 = arith.constant 0 : index
    %3 = vector.load %arg2[%c0, %c0_1] : memref<16x32xf32, #tpu.memory_space<vmem>>, vector<16x32xf32>
    %c0_2 = arith.constant 0 : index
    %c0_3 = arith.constant 0 : index
    %4 = vector.load %arg3[%c0_2, %c0_3] : memref<16x32xf32, #tpu.memory_space<vmem>>, vector<16x32xf32>
    %cst = arith.constant dense<0.000000e+00> : vector<16x16xf32>
    %5 = tpu.matmul %3, %4, %cst {dimension_numbers = #tpu.dot_dimension_numbers<[1], [1], [0], [0], [0, 0, 1, 0], [], []>} : vector<16x32xf32>, vector<16x32xf32>, vector<16x16xf32> -> vector<16x16xf32>
    %cst_4 = arith.constant 1.000000e+00 : f32
    %6 = vector.broadcast %cst_4 : f32 to vector<16x16xf32>
    %7 = arith.subf %5, %6 : vector<16x16xf32>
    %cst_5 = arith.constant 14.2857141 : f32
    %8 = vector.broadcast %cst_5 : f32 to vector<16x16xf32>
    %9 = arith.mulf %7, %8 : vector<16x16xf32>
    %c16_i32 = arith.constant 16 : i32
    %10 = arith.muli %arg0, %c16_i32 : i32
    %11 = tpu.iota {dimensions = array<i32: 0>} : vector<16x1xi32>
    %12 = vector.broadcast %10 : i32 to vector<16x1xi32>
    %13 = arith.addi %12, %11 : vector<16x1xi32>
    %c16_i32_6 = arith.constant 16 : i32
    %14 = arith.muli %arg1, %c16_i32_6 : i32
    %15 = tpu.iota {dimensions = array<i32: 1>} : vector<1x16xi32>
    %16 = vector.broadcast %14 : i32 to vector<1x16xi32>
    %17 = arith.addi %16, %15 : vector<1x16xi32>
    %18 = vector.broadcast %13 : vector<16x1xi32> to vector<16x16xi32>
    %19 = vector.broadcast %17 : vector<1x16xi32> to vector<16x16xi32>
    %20 = arith.cmpi ne, %18, %19 : vector<16x16xi32>
    %c16_i32_7 = arith.constant 16 : i32
    %21 = vector.broadcast %c16_i32_7 : i32 to vector<1x16xi32>
    %22 = arith.cmpi slt, %17, %21 : vector<1x16xi32>
    %23 = vector.broadcast %22 : vector<1x16xi1> to vector<16x16xi1>
    %24 = arith.andi %20, %23 : vector<16x16xi1>
    %c0_8 = arith.constant 0 : index
    %c0_9 = arith.constant 0 : index
    %25 = vector.load %arg4[%c0_8, %c0_9] : memref<16x1xi32, #tpu.memory_space<vmem>>, vector<16x1xi32>
    %c0_10 = arith.constant 0 : index
    %c0_11 = arith.constant 0 : index
    %26 = vector.load %arg5[%c0_10, %c0_11] : memref<1x16xi32, #tpu.memory_space<vmem>>, vector<1x16xi32>
    %27 = vector.broadcast %25 : vector<16x1xi32> to vector<16x16xi32>
    %28 = vector.broadcast %26 : vector<1x16xi32> to vector<16x16xi32>
    %29 = arith.cmpi eq, %27, %28 : vector<16x16xi32>
    %30 = arith.andi %24, %29 : vector<16x16xi1>
    %c0_12 = arith.constant 0 : index
    %c0_13 = arith.constant 0 : index
    %31 = vector.load %arg7[%c0_12, %c0_13] : memref<16x1xf32, #tpu.memory_space<vmem>>, vector<16x1xf32>
    %32 = math.exp %9 : vector<16x16xf32>
    %cst_14 = arith.constant 0.000000e+00 : f32
    %33 = vector.broadcast %cst_14 : f32 to vector<16x16xf32>
    %34 = arith.select %24, %32, %33 : vector<16x16xi1>, vector<16x16xf32>
    %cst_15 = arith.constant dense<0.000000e+00> : vector<16xf32>
    %35 = vector.multi_reduction <add>, %34, %cst_15 [1] : vector<16x16xf32> to vector<16xf32>
    %36 = vector.shape_cast %35 : vector<16xf32> to vector<16x1xf32>
    %37 = arith.addf %31, %36 : vector<16x1xf32>
    %c0_16 = arith.constant 0 : index
    %c0_17 = arith.constant 0 : index
    %38 = vector.load %arg7[%c0_16, %c0_17] : memref<16x1xf32, #tpu.memory_space<vmem>>, vector<16x1xf32>
    tpu.vector_store %arg7[%c0_16, %c0_17], %37 {strides = array<i32>} : memref<16x1xf32, #tpu.memory_space<vmem>>, vector<16x1xf32>,
    %c0_18 = arith.constant 0 : index
    %c0_19 = arith.constant 0 : index
    %39 = vector.load %arg8[%c0_18, %c0_19] : memref<16x1xf32, #tpu.memory_space<vmem>>, vector<16x1xf32>
    %cst_20 = arith.constant 0.000000e+00 : f32
    %40 = vector.broadcast %cst_20 : f32 to vector<16x16xf32>
    %41 = arith.select %30, %9, %40 : vector<16x16xi1>, vector<16x16xf32>
    %cst_21 = arith.constant dense<0.000000e+00> : vector<16xf32>
    %42 = vector.multi_reduction <add>, %41, %cst_21 [1] : vector<16x16xf32> to vector<16xf32>
    %43 = vector.shape_cast %42 : vector<16xf32> to vector<16x1xf32>
    %44 = arith.addf %39, %43 : vector<16x1xf32>
    %c0_22 = arith.constant 0 : index
    %c0_23 = arith.constant 0 : index
    %45 = vector.load %arg8[%c0_22, %c0_23] : memref<16x1xf32, #tpu.memory_space<vmem>>, vector<16x1xf32>
    tpu.vector_store %arg8[%c0_22, %c0_23], %44 {strides = array<i32>} : memref<16x1xf32, #tpu.memory_space<vmem>>, vector<16x1xf32>,
    %c0_i32_24 = arith.constant 0 : i32
    %46 = arith.cmpi eq, %arg1, %c0_i32_24 : i32
    %47 = arith.extui %46 : i1 to i32
    %c0_i32_25 = arith.constant 0 : i32
    %48 = arith.cmpi ne, %47, %c0_i32_25 : i32
    scf.if %48 {
      %c0_26 = arith.constant 0 : index
      %c0_27 = arith.constant 0 : index
      %49 = vector.load %arg8[%c0_26, %c0_27] : memref<16x1xf32, #tpu.memory_space<vmem>>, vector<16x1xf32>
      %cst_28 = arith.constant 1.000000e+00 : f32
      %50 = vector.broadcast %cst_28 : f32 to vector<16x1xf32>
      %51 = arith.mulf %49, %50 : vector<16x1xf32>
      %c0_29 = arith.constant 0 : index
      %c0_30 = arith.constant 0 : index
      %52 = vector.load %arg7[%c0_29, %c0_30] : memref<16x1xf32, #tpu.memory_space<vmem>>, vector<16x1xf32>
      %53 = math.log %52 : vector<16x1xf32>
      %54 = arith.subf %51, %53 : vector<16x1xf32>
      %c16_i32_31 = arith.constant 16 : i32
      %55 = vector.broadcast %c16_i32_31 : i32 to vector<16x1xi32>
      %56 = arith.cmpi slt, %13, %55 : vector<16x1xi32>
      %cst_32 = arith.constant 0.000000e+00 : f32
      %57 = vector.broadcast %cst_32 : f32 to vector<16x1xf32>
      %58 = arith.select %56, %54, %57 : vector<16x1xi1>, vector<16x1xf32>
      %59 = vector.shape_cast %58 : vector<16x1xf32> to vector<1x16x1xf32>
      %cst_33 = arith.constant dense<0.000000e+00> : vector<1xf32>
      %60 = vector.multi_reduction <add>, %59, %cst_33 [1, 2] : vector<1x16x1xf32> to vector<1xf32>
      %61 = vector.shape_cast %60 : vector<1xf32> to vector<1x1x1xf32>
      %62 = vector.extract %61[0, 0, 0] : f32 from vector<1x1x1xf32>
      %63 = vector.broadcast %62 : f32 to vector<1x8x128xf32>
      %c0_34 = arith.constant 0 : index
      %c0_35 = arith.constant 0 : index
      %c0_36 = arith.constant 0 : index
      %64 = vector.load %arg6[%c0_34, %c0_35, %c0_36] : memref<1x8x128xf32, #tpu.memory_space<vmem>>, vector<1x8x128xf32>
      tpu.vector_store %arg6[%c0_34, %c0_35, %c0_36], %63 {strides = array<i32>} : memref<1x8x128xf32, #tpu.memory_space<vmem>>, vector<1x8x128xf32>,
    } else {
    }
    return
  }
  func.func @transform_0(%arg0: i32, %arg1: i32) -> (i32, i32) {
    %c0_i32 = arith.constant 0 : i32
    %c0_i32_0 = arith.constant 0 : i32
    return %arg0, %c0_i32 : i32, i32
  }
  func.func @transform_1(%arg0: i32, %arg1: i32) -> (i32, i32) {
    %c0_i32 = arith.constant 0 : i32
    %c0_i32_0 = arith.constant 0 : i32
    return %arg1, %c0_i32 : i32, i32
  }
  func.func @transform_2(%arg0: i32, %arg1: i32) -> (i32, i32) {
    %c0_i32 = arith.constant 0 : i32
    %c0_i32_0 = arith.constant 0 : i32
    return %arg0, %c0_i32 : i32, i32
  }
  func.func @transform_3(%arg0: i32, %arg1: i32) -> (i32, i32) {
    %c0_i32 = arith.constant 0 : i32
    %c0_i32_0 = arith.constant 0 : i32
    return %c0_i32, %arg1 : i32, i32
  }
  func.func @transform_4(%arg0: i32, %arg1: i32) -> (i32, i32, i32) {
    %c0_i32 = arith.constant 0 : i32
    %c0_i32_0 = arith.constant 0 : i32
    %c0_i32_1 = arith.constant 0 : i32
    return %arg0, %c0_i32, %c0_i32_0 : i32, i32, i32
  }
}

</mosaic_0001>

<bundles_post_ra>
// kernel: tpu_custom_call.1
= control target key start
LH: loop header
LB: loop body
LE: loop exit
PB: predicated region body
PF: predicated region fallthrough
CT: control target
= control target key end

     0   :  { %9 = vsyncpa [#allocation5], 0  ;;  %s408_s0 = inlined_call_operand.vmem [shape: f32[16,32], index: 0, kind: input, shape index: {}]   ;;  %s409_s1 = inlined_call_operand.hbm [shape: f32[16,32], index: 1, kind: input, shape index: {}]   ;;  %s410_s2 = inlined_call_operand.vmem [shape: s32[16,1], index: 2, kind: input, shape index: {}]   ;;  %s411_s3 = inlined_call_operand.vmem [shape: s32[1,16], index: 3, kind: input, shape index: {}]   ;;  %s412_s4 = inlined_call_operand.hbm [shape: f32[1,8,128], index: 4, kind: output, shape index: {}]  }
   0x1   :  { %10 = vsyncpa [#allocation6], 0  ;;  %s332_s15 = smov [#allocation4]  }
   0x2   :  { %s18_s16 = sshll.u32 %s332_s15, 4  ;;  %s19_s16 = int_to_ptr.vmem [resolvable:$true] %s18_s16 }
   0x3   :  { %s296_s17 = scalar_lea.vmem %s19_s16, 256  ;;  %p301_p1 = scmp.lt.s32.totalorder %s19_s16, %s19_s16 }
   0x4   :  { %p297_p0 = scmp.ne.s32.totalorder %s19_s16, %s296_s17  ;;  %p302_p2 = scmp.lt.s32.totalorder %s296_s17, %s296_s17 }
   0x6   :  { %p303_p3 = por %p302_p2, %p301_p1 }
   0x8   :  { %p304_p4 = pnand %p303_p3, %p297_p0 }
   0xa   :  { %307 = shalt.err (!%p304_p4)
}
   0xb   :  { %s333_s18 = smov 128   ;;  %s334_s19 = smov 8  }
   0xc   :  { %24 = dma.hbm_to_vmem [thread:$0]  %s409_s1, 256, %s19_s16, [#allocation5], %s333_s18, %s333_s18, %s334_s19  }
   0xd   :  { %328 = dma.done.wait [#allocation5], 256  }
   0xe   :  { %329 = vsyncadd [#allocation5], 4294967040  ;;  %v335_v0 = vmov 0   ;;  %vm45_vm0 = vcmask 261120   ;;  %v44_v1 = vld [vmem:[#allocation4 + $0x8] sm:$0xff]  ;;  %v43_v2 = vld [vmem:[#allocation4] sm:$0xff]  ;;  %v138_v8 = vlaneseq }
   0xf   :  { %279 = vset.pattern.permute.xlu0 %v335_v0  ;;  %v41_v3 = vld [vmem:[%s408_s0] sm:$0xff]  ;;  %264 = vmatprep.subr.msk.mxu0 %vm45_vm0, %v44_v1  ;;  %v157_v5 = vld [vmem:[%s410_s2 + $0x8] sm:$0xff]  ;;  %vm36_vm1 = vcmask 7168   ;;  %v336_v7 = vmov 0.0   ;;  %vm181_vm7 = vcmask 130048  }
  0x10   :  { %268 = vmatprep.mubr.msk.f32.mxu0 %vm45_vm0, %v41_v3  ;;  %v156_v4 = vld [vmem:[%s410_s2] sm:$0xff]  ;;  %265 = vmatpush3.xpose.msk.msra.mxu0 %vm45_vm0, %v44_v1  ;;  %v42_v6 = vld [vmem:[%s408_s0 + $0x8] sm:$0xff]  ;;  %39 = vst.msk [vmem:[#allocation3] sm:$0xff] %vm36_vm1, %v336_v7  ;;  %37 = vst.msk [vmem:[#allocation2] sm:$0xff] %vm36_vm1, %v336_v7  ;;  %v139_v9 = vshrl.u32 %v138_v8, 7  ;;  %v146_v10 = vand.u32 127, %v138_v8 }
  0x11   :  { %160 = vperm.xlu0 %279, %v156_v4   ;;  %266 = vmatprep.subr.msk.mxu0 %vm45_vm0, %v43_v2  ;;  %38 = vst.msk [vmem:[#allocation2 + $0x8] sm:$0xff] %vm36_vm1, %v336_v7  ;;  %40 = vst.msk [vmem:[#allocation3 + $0x8] sm:$0xff] %vm36_vm1, %v336_v7  ;;  %v259_v11 = vld [vmem:[%s411_s3] ss:$0 sm:$0xff]  ;;  %s337_s0 = smov [#allocation7]  }
  0x12   :  { %vm149_vm2 = vcmp.ne.s32.totalorder %v139_v9, %v146_v10  ;;  %vm151_vm3 = vcmp.lt.s32.totalorder %v146_v10, 16  ;;  %v140_v24 = vadd.s32 8, %v139_v9  ;;  %s244_s3 = sshll.u32 %s337_s0, 4  ;;  %s245_s3 = int_to_ptr.vmem [resolvable:$true] %s244_s3 }
  0x13   :  { %vm386_vm4 = vmand %vm149_vm2, %vm151_vm3  ;;  %s308_s5 = scalar_lea.vmem %s245_s3, 128  ;;  %p313_p6 = scmp.lt.s32.totalorder %s245_s3, %s245_s3 }
  0x14   :  { %267 = vmatpush3.xpose.msk.msra.mxu0 %vm45_vm0, %v43_v2  ;;  %vm150_vm8 = vcmp.ne.s32.totalorder %v140_v24, %v146_v10  ;;  %p309_p5 = scmp.ne.s32.totalorder %s245_s3, %s308_s5  ;;  %p314_p7 = scmp.lt.s32.totalorder %s308_s5, %s308_s5 }
  0x15   :  { %163 = vperm.xlu0 %279, %v157_v5   ;;  %vm155_vm9 = vmand %vm150_vm8, %vm151_vm3 }
  0x16   :  { %p315_p8 = por %p314_p7, %p313_p6 }
  0x17   :  { %269 = vmatmul.mubr.msk.f32.vlgmr.msra.gmra.mxu0 %vm45_vm0, %v42_v6  ;;  %v193_v34 = vld [vmem:[#allocation3] sm:$0xff]  ;;  %v173_v37 = vld [vmem:[#allocation2] sm:$0xff] }
  0x18   :  { %v174_v40 = vld [vmem:[#allocation2 + $0x8] sm:$0xff]  ;;  %v194_v43 = vld [vmem:[#allocation3 + $0x8] sm:$0xff]  ;;  %p316_p9 = pnand %p315_p8, %p309_p5 }
  0x8c   :  { %v161_v12 = vpop.permute.xlu0 %160 }
  0x8d   :  { %vm169_vm5 = vcmp.eq.s32.totalorder %v161_v12, %v259_v11 }
  0x8e   :  { %vm171_vm6 = vmand %vm386_vm4, %vm169_vm5 }
  0x90   :  { %v164_v25 = vpop.permute.xlu0 %163 }
  0x91   :  { %vm170_vm10 = vcmp.eq.s32.totalorder %v164_v25, %v259_v11 }
  0x92   :  { %vm172_vm11 = vmand %vm155_vm9, %vm170_vm10 }
  0xd7   :  { %v270_v13 = vpop.f32.mrf.mxu0 }
  0xd8   :  { %v258_v15 = vadd.f32 -1.0, %v270_v13 }
  0xd9   :  { %v124_v16 = vpop.f32.mrf.mxu0 }
  0xda   :  { %v136_v17 = vmul.f32 14.285714, %v258_v15  ;;  %v257_v18 = vadd.f32 -1.0, %v124_v16 }
  0xdc   :  { %v177_v19 = vmul.f32 1.442695, %v136_v17  ;;  %v135_v20 = vmul.f32 14.285714, %v257_v18  ;;  %v196_v32 = vsel %vm172_vm11, %v136_v17, 0.0 }
  0xdd   :  { %v200_v33 = vsel %vm181_vm7, %v196_v32, 0.0 }
  0xde   :  { %v175_v21 = vmul.f32 1.442695, %v135_v20  ;;  %v195_v22 = vsel %vm171_vm6, %v135_v20, 0.0  ;;  %280 = vpow2.f32 %v177_v19 }
  0xdf   :  { %v197_v23 = vsel %vm181_vm7, %v195_v22, 0.0 }
  0xe0   :  { %282 = vpow2.f32 %v175_v21  ;;  %198 = vadd.xlane.f32.xlu0 %v197_v23 }
  0xeb   :  { %v281_v26 = vpop.eup %280 }
  0xec   :  { %v180_v30 = vsel %vm155_vm9, %v281_v26, 0.0 }
  0xed   :  { %v283_v27 = vpop.eup %282  ;;  %v185_v31 = vsel %vm181_vm7, %v180_v30, 0.0 }
  0xee   :  { %v179_v28 = vsel %vm386_vm4, %v283_v27, 0.0 }
  0xef   :  { %v182_v29 = vsel %vm181_vm7, %v179_v28, 0.0 }
  0xf0   :  { %183 = vadd.xlane.f32.xlu1 %v182_v29 }
  0xf4   :  { %186 = vadd.xlane.f32.xlu1 %v185_v31 }
  0xf8   :  { %201 = vadd.xlane.f32.xlu1 %v200_v33 }
 0x169   :  { %v199_v35 = vpop.xlane.xlu0 %198 }
 0x16a   :  { %v203_v36 = vadd.f32 %v199_v35, %v193_v34 }
 0x16c   :  { %205 = vst.msk [vmem:[#allocation3] sm:$0xff] %vm36_vm1, %v203_v36 }
 0x173   :  { %v210_v51 = vld [vmem:[#allocation3] sm:$0xff] }
 0x179   :  { %v184_v38 = vpop.xlane.xlu1 %183 }
 0x17a   :  { %v188_v39 = vadd.f32 %v184_v38, %v173_v37 }
 0x17c   :  { %191 = vst.msk [vmem:[#allocation2] sm:$0xff] %vm36_vm1, %v188_v39 }
 0x17d   :  { %v187_v41 = vpop.xlane.xlu1 %186 }
 0x17e   :  { %v189_v42 = vadd.f32 %v187_v41, %v174_v40 }
 0x180   :  { %192 = vst.msk [vmem:[#allocation2 + $0x8] sm:$0xff] %vm36_vm1, %v189_v42 }
 0x181   :  { %v202_v44 = vpop.xlane.xlu1 %201 }
 0x182   :  { %v204_v45 = vadd.f32 %v202_v44, %v194_v43 }
 0x183   :  { %v212_v46 = vld [vmem:[#allocation2] sm:$0xff] }
 0x184   :  { %206 = vst.msk [vmem:[#allocation3 + $0x8] sm:$0xff] %vm36_vm1, %v204_v45  ;;  %284 = vlog2.f32 %v212_v46 }
 0x187   :  { %v213_v47 = vld [vmem:[#allocation2 + $0x8] sm:$0xff] }
 0x188   :  { %286 = vlog2.f32 %v213_v47 }
 0x18b   :  { %v211_v54 = vld [vmem:[#allocation3 + $0x8] sm:$0xff] }
 0x191   :  { %v285_v48 = vpop.eup %284 }
 0x192   :  { %v215_v49 = vmul.f32 0.6931472, %v285_v48 }
 0x194   :  { %v218_v53 = vsub.f32 %v210_v51, %v215_v49 }
 0x195   :  { %v287_v50 = vpop.eup %286 }
 0x196   :  { %v217_v52 = vmul.f32 0.6931472, %v287_v50  ;;  %v224_v56 = vsel %vm36_vm1, %v218_v53, 0.0 }
 0x198   :  { %v219_v55 = vsub.f32 %v211_v54, %v217_v52 }
 0x19a   :  { %v225_v57 = vsel %vm36_vm1, %v219_v55, 0.0 }
 0x19b   :  { %v226_v58 = vadd.f32 %v225_v57, %v224_v56 }
 0x19d   :  { %227 = vadd.xlane.f32.xlu1 %v226_v58 }
 0x226   :  { %v228_v59 = vpop.xlane.xlu1 %227 }
 0x227   :  { %v229_v60 = vrot.slane %v228_v59, 4 }
 0x229   :  { %v230_v61 = vadd.f32 %v229_v60, %v228_v59 }
 0x22b   :  { %v231_v62 = vrot.slane %v230_v61, 2 }
 0x22d   :  { %v232_v63 = vadd.f32 %v231_v62, %v230_v61 }
 0x22f   :  { %v233_v0 = vrot.slane %v232_v63, 1 }
 0x231   :  { %v234_v1 = vadd.f32 %v233_v0, %v232_v63 }
 0x233   :  { %271 = vpush %v234_v1 }
 0x264   :  { %s272_s30 = spop %271 }
 0x265   :  { %v236_v2 = vstv %s272_s30 }
 0x266   :  { %237 = vst [vmem:[#allocation7] sm:$0xff] %v236_v2 }
 0x267   :  { %319 = shalt.err (!%p316_p9)
}
 0x268   :  { %247 = dma.vmem_to_hbm [thread:$0]  %s245_s3, 128, %s412_s4, [#allocation6]  }
 0x269   :  { %330 = dma.done.wait [#allocation6], 128  }
 0x26a   :  { %331 = vsyncadd [#allocation6], 4294967168 }
 0x26b   :  { %251 = vsyncpa [#allocation5], 1 }
 0x26c   :  { %252 = vsyncpa [#allocation6], 1 }

</bundles_post_ra>
